<compile_context>
chip_gen: v5e
topology: v5e:2x2
jax: 0.10.0
libtpu: 0.0.40
codegen_flags: <defaults>
</compile_context>

<pallas_src>
import functools
import math

import jax
import jax.numpy as jnp
from jax.experimental import pallas as pl
from jax.experimental.pallas import tpu as pltpu


def _round_up(x: int, m: int) -> int:
    return ((x + m - 1) // m) * m


def _choose_tiles(B: int, F: int, dtype, tb=None, tf=None, budget: int = 8 << 20):
    itemsize = jnp.dtype(dtype).itemsize
    pack = max(8, 32 // itemsize)            # sublane pack: 8 f32 / 16 bf16
    f128 = _round_up(F, 128)
    total_bytes = B * F * itemsize

    if tf is None:
        # Priority 1: grow TF toward full F (fully contiguous row reads and a
        # lane-dense output store), bounded by the per-tile budget at min TB.
        max_tf = max(128, (budget // (pack * itemsize)) // 128 * 128)
        tf = min(f128, max_tf)
        # Keep >= 2 F steps so the "parallel" axis can shard across the two
        # TensorCores on v7x once there is enough work to matter.
        if tf == f128 and f128 >= 256 and total_bytes >= (2 << 20):
            tf = _round_up(f128 // 2, 128)
    else:
        tf = _round_up(tf, 128)

    if tb is None:
        # Priority 2: grow TB (reduction rows per step) within the budget.
        max_tb = max(pack, (budget // (tf * itemsize)) // pack * pack)
        tb = min(_round_up(B, pack), max_tb)
    else:
        tb = _round_up(tb, pack)

    return tb, tf, pack


def _mean_kernel(r_ref, o_ref, acc_ref, *, tb: int, tf: int, group: int,
                 rows_last: int, inv_b: float):
    b = pl.program_id(1)
    nb = pl.num_programs(1)

    @pl.when(b == 0)
    def _():
        acc_ref[...] = jnp.zeros_like(acc_ref)

    def accumulate(rows: int):
        # Add the first `rows` (static) rows of the current (tb, tf) tile into
        # the (group, tf) f32 accumulator with whole-vreg VPU adds; the
        # cross-sublane reduce is deferred to the final step.
        full = (rows // group) * group
        if full > 0:
            xf = r_ref[0:full, :]
            acc_ref[...] += jnp.sum(
                xf.reshape(full // group, group, tf), axis=0, dtype=jnp.float32)
        tail = rows - full
        if tail > 0:
            xt = r_ref[full:full + group, :]
            row = jax.lax.broadcasted_iota(jnp.int32, (group, tf), 0)
            xt = jnp.where(row < tail, xt, jnp.zeros_like(xt))
            acc_ref[...] += xt.astype(jnp.float32)

    if rows_last == tb:
        # B divides TB evenly: no boundary rows anywhere, no masking needed.
        accumulate(tb)
    else:
        # Only the last B tile is ragged; mask just that one (garbage rows
        # from the boundary block must not reach the sum).
        @pl.when(b < nb - 1)
        def _():
            accumulate(tb)

        @pl.when(b == nb - 1)
        def _():
            accumulate(rows_last)

    @pl.when(b == nb - 1)
    def _():
        total = jnp.sum(acc_ref[...], axis=0, keepdims=True)   # (1, tf) f32
        o_ref[...] = (total * inv_b).astype(o_ref.dtype)


def mean_aggregator(r: jax.Array, *, tb: int | None = None, tf: int | None = None,
                    small_input_fallback_bytes: int = 1 << 20,
                    tile_budget_bytes: int = 8 << 20,
                    vmem_limit_bytes: int = 40 << 20) -> jax.Array:
    """Equivalent of MeanAggregator().forward(r): mean over axis 0."""
    assert r.ndim >= 1, "need at least one axis to reduce"
    if not jnp.issubdtype(r.dtype, jnp.floating):
        # torch.Tensor.mean raises for integer dtypes as well.
        raise TypeError(f"mean_aggregator requires a floating dtype, got {r.dtype}")

    B = r.shape[0]
    trailing = r.shape[1:]
    F = math.prod(trailing) if trailing else 1

    # Degenerate shapes: empty trailing extent -> empty result;
    # empty reduction axis -> NaNs (float mean-of-nothing semantics).
    if F == 0:
        return jnp.zeros(trailing, dtype=r.dtype)
    if B == 0:
        return jnp.full(trailing, jnp.nan, dtype=r.dtype)

    itemsize = jnp.dtype(r.dtype).itemsize
    total_bytes = B * F * itemsize
    if total_bytes < small_input_fallback_bytes:
        # Tiny aggregations: kernel launch overhead dominates; plain XLA wins.
        return jnp.mean(r.astype(jnp.float32), axis=0).astype(r.dtype)

    r2 = r.reshape(B, F)                       # bitcast reshape, no HBM copy

    TB, TF, pack = _choose_tiles(B, F, r.dtype, tb=tb, tf=tf, budget=tile_budget_bytes)
    nb = pl.cdiv(B, TB)                        # reduction steps (last grid axis)
    nf = pl.cdiv(F, TF)                        # parallel F tiles
    f_out = nf * TF                            # output padded to whole F tiles
    rem = B % TB
    rows_last = rem if rem else TB

    out2 = pl.pallas_call(
        functools.partial(_mean_kernel, tb=TB, tf=TF, group=pack,
                          rows_last=rows_last, inv_b=1.0 / B),
        out_shape=jax.ShapeDtypeStruct((1, f_out), r.dtype),
        grid_spec=pltpu.PrefetchScalarGridSpec(
            num_scalar_prefetch=0,
            grid=(nf, nb),                     # reduction (B) axis last
            # If profiling shows exposed DMA at F-tile transitions, try
            # pipeline_mode=pl.Buffered(3) here (costs one extra input tile).
            in_specs=[pl.BlockSpec((TB, TF), lambda f, b: (b, f))],
            out_specs=pl.BlockSpec((1, TF), lambda f, b: (0, f)),
            scratch_shapes=[pltpu.VMEM((pack, TF), jnp.float32)],
        ),
        compiler_params=pltpu.CompilerParams(
            dimension_semantics=("parallel", "arbitrary"),
            vmem_limit_bytes=vmem_limit_bytes,
        ),
    )(r2)

    out = out2[0, :F]
    return out.reshape(trailing) if len(trailing) > 0 else out.reshape(())


if __name__ == "__main__":
    key = jax.random.PRNGKey(0)
    k1, k2, k3, k4 = jax.random.split(key, 4)

    # Force the Pallas path in tests (fast-path threshold set to 0).
    run = functools.partial(mean_aggregator, small_input_fallback_bytes=0)

    # 1) Typical small aggregator input (seq=8, hidden=32), f32; single tile.
    r1 = jax.random.normal(k1, (8, 32), dtype=jnp.float32)
    out1 = jax.block_until_ready(run(r1))
    ref1 = jnp.mean(r1, axis=0)
    assert out1.shape == ref1.shape, (out1.shape, ref1.shape)
    assert jnp.allclose(out1, ref1, atol=1e-5, rtol=1e-4)

    # 2) Non-divisible shapes with forced small tiles: exercises the pad-free
    #    ragged last-B-tile mask, multi-step reduction, and multiple F tiles.
    r2 = jax.random.normal(k2, (37, 3, 200), dtype=jnp.float32)
    out2 = jax.block_until_ready(run(r2, tb=8, tf=128))
    ref2 = jnp.mean(r2, axis=0)
    assert out2.shape == ref2.shape, (out2.shape, ref2.shape)
    assert jnp.allclose(out2, ref2, atol=1e-5, rtol=1e-4)

    # 3) bf16 input (sublane pack 16 path, fp32 accumulation inside kernel).
    r3 = jax.random.normal(k3, (24, 64), dtype=jnp.bfloat16)
    out3 = jax.block_until_ready(run(r3))
    ref3 = jnp.mean(r3.astype(jnp.float32), axis=0).astype(jnp.bfloat16)
    assert out3.shape == ref3.shape, (out3.shape, ref3.shape)
    assert jnp.allclose(out3.astype(jnp.float32), ref3.astype(jnp.float32),
                        atol=2e-2, rtol=2e-2)

    # 4) Default tile selection: wider F triggers the >=2 F-tile (megacore)
    #    split, wide contiguous reads, and the static tail mask (300 % 8 != 0).
    r4 = jax.random.normal(k4, (300, 2000), dtype=jnp.float32)
    out4 = jax.block_until_ready(run(r4))
    ref4 = jnp.mean(r4, axis=0)
    assert out4.shape == ref4.shape, (out4.shape, ref4.shape)
    assert jnp.allclose(out4, ref4, atol=2e-5, rtol=1e-4)

    # 5) Small-input fast path (no pallas_call) still matches.
    out5 = jax.block_until_ready(mean_aggregator(r1))
    assert jnp.allclose(out5, ref1, atol=1e-5, rtol=1e-4)

    print("KERNEL_OK")
</pallas_src>

<mosaic_0001>
module attributes {stable_mosaic.version = 11 : i64} {
  func.func @_mean_kernel(%arg0: i32, %arg1: i32, %arg2: memref<8x128xf32, #tpu.memory_space<vmem>>, %arg3: memref<1x128xf32, #tpu.memory_space<vmem>>, %arg4: memref<8x128xf32, #tpu.memory_space<vmem>>) attributes {dimension_semantics = [#tpu.dimension_semantics<parallel>, #tpu.dimension_semantics<arbitrary>], iteration_bounds = array<i64: 1, 1>, scalar_prefetch = 0 : i64, scratch_operands = 1 : i64, tpu.core_type = #tpu.core_type<tc>, window_params = [{transform_indices = @transform_0, window_bounds = array<i64: 8, 128>}, {transform_indices = @transform_1, window_bounds = array<i64: 1, 128>}]} {
    %c0_i32 = arith.constant 0 : i32
    %0 = arith.cmpi eq, %arg1, %c0_i32 : i32
    %1 = arith.extui %0 : i1 to i32
    %c0_i32_0 = arith.constant 0 : i32
    %2 = arith.cmpi ne, %1, %c0_i32_0 : i32
    scf.if %2 {
      %cst_8 = arith.constant 0.000000e+00 : f32
      %12 = vector.broadcast %cst_8 : f32 to vector<8x128xf32>
      %c0_9 = arith.constant 0 : index
      %c0_10 = arith.constant 0 : index
      %13 = vector.load %arg4[%c0_9, %c0_10] : memref<8x128xf32, #tpu.memory_space<vmem>>, vector<8x128xf32>
      tpu.vector_store %arg4[%c0_9, %c0_10], %12 {strides = array<i32>} : memref<8x128xf32, #tpu.memory_space<vmem>>, vector<8x128xf32>,
    } else {
    }
    %c0 = arith.constant 0 : index
    %c0_1 = arith.constant 0 : index
    %3 = vector.load %arg2[%c0, %c0_1] : memref<8x128xf32, #tpu.memory_space<vmem>>, vector<8x128xf32>
    %c0_2 = arith.constant 0 : index
    %c0_3 = arith.constant 0 : index
    %4 = vector.load %arg4[%c0_2, %c0_3] : memref<8x128xf32, #tpu.memory_space<vmem>>, vector<8x128xf32>
    %5 = vector.shape_cast %3 : vector<8x128xf32> to vector<1x8x128xf32>
    %cst = arith.constant dense<0.000000e+00> : vector<8x128xf32>
    %6 = vector.multi_reduction <add>, %5, %cst [0] : vector<1x8x128xf32> to vector<8x128xf32>
    %7 = arith.addf %4, %6 : vector<8x128xf32>
    %c0_4 = arith.constant 0 : index
    %c0_5 = arith.constant 0 : index
    %8 = vector.load %arg4[%c0_4, %c0_5] : memref<8x128xf32, #tpu.memory_space<vmem>>, vector<8x128xf32>
    tpu.vector_store %arg4[%c0_4, %c0_5], %7 {strides = array<i32>} : memref<8x128xf32, #tpu.memory_space<vmem>>, vector<8x128xf32>,
    %c0_i32_6 = arith.constant 0 : i32
    %9 = arith.cmpi eq, %arg1, %c0_i32_6 : i32
    %10 = arith.extui %9 : i1 to i32
    %c0_i32_7 = arith.constant 0 : i32
    %11 = arith.cmpi ne, %10, %c0_i32_7 : i32
    scf.if %11 {
      %c0_8 = arith.constant 0 : index
      %c0_9 = arith.constant 0 : index
      %12 = vector.load %arg4[%c0_8, %c0_9] : memref<8x128xf32, #tpu.memory_space<vmem>>, vector<8x128xf32>
      %cst_10 = arith.constant dense<0.000000e+00> : vector<128xf32>
      %13 = vector.multi_reduction <add>, %12, %cst_10 [0] : vector<8x128xf32> to vector<128xf32>
      %14 = vector.shape_cast %13 : vector<128xf32> to vector<1x128xf32>
      %cst_11 = arith.constant 1.250000e-01 : f32
      %15 = vector.broadcast %cst_11 : f32 to vector<1x128xf32>
      %16 = arith.mulf %14, %15 : vector<1x128xf32>
      %c0_12 = arith.constant 0 : index
      %c0_13 = arith.constant 0 : index
      %17 = vector.load %arg3[%c0_12, %c0_13] : memref<1x128xf32, #tpu.memory_space<vmem>>, vector<1x128xf32>
      tpu.vector_store %arg3[%c0_12, %c0_13], %16 {strides = array<i32>} : memref<1x128xf32, #tpu.memory_space<vmem>>, vector<1x128xf32>,
    } else {
    }
    return
  }
  func.func @transform_0(%arg0: i32, %arg1: i32) -> (i32, i32) {
    %c0_i32 = arith.constant 0 : i32
    return %arg1, %arg0 : i32, i32
  }
  func.func @transform_1(%arg0: i32, %arg1: i32) -> (i32, i32) {
    %c0_i32 = arith.constant 0 : i32
    %c0_i32_0 = arith.constant 0 : i32
    return %c0_i32, %arg0 : i32, i32
  }
}

</mosaic_0001>

<bundles_post_ra>
// kernel: tpu_custom_call.1
= control target key start
LH: loop header
LB: loop body
LE: loop exit
PB: predicated region body
PF: predicated region fallthrough
CT: control target
= control target key end

     0   :  { %6 = vsyncpa [#allocation4], 0  ;;  %s134_s0 = inlined_call_operand.hbm [shape: f32[8,32], index: 0, kind: input, shape index: {}]   ;;  %s135_s1 = inlined_call_operand.hbm [shape: f32[1,128], index: 1, kind: output, shape index: {}]  }
   0x1   :  { %7 = vsyncpa [#allocation5], 0  ;;  %s13_s8 = sshll.u32 %s134_s0, 4  ;;  %s116_s9 = smov [#allocation3]   ;;  %s14_s8 = int_to_ptr.hbm [resolvable:$true] %s13_s8 }
   0x2   :  { %s15_s10 = sshll.u32 %s116_s9, 4  ;;  %s16_s10 = int_to_ptr.vmem [resolvable:$true] %s15_s10 }
   0x3   :  { %18 = dma.hbm_to_vmem [thread:$0]  %s14_s8, 128, %s16_s10, [#allocation4]  }
   0x4   :  { %112 = dma.done.wait [#allocation4], 128  }
   0x5   :  { %113 = vsyncadd [#allocation4], 4294967168  ;;  %v28_v0 = vld [vmem:[#allocation3] sm:$0xff]  ;;  %s117_s11 = smov [#allocation6]   ;;  %s52_s15 = sshll.u32 %s135_s1, 4  ;;  %s53_s15 = int_to_ptr.hbm [resolvable:$true] %s52_s15 }
   0x6   :  { %v37_v1 = vrot.slane %v28_v0, 4  ;;  %s50_s12 = sshll.u32 %s117_s11, 4  ;;  %s51_s12 = int_to_ptr.vmem [resolvable:$true] %s50_s12 }
   0x8   :  { %v38_v2 = vadd.f32 %v37_v1, %v28_v0 }
   0xa   :  { %v39_v3 = vrot.slane %v38_v2, 2 }
   0xc   :  { %v40_v4 = vadd.f32 %v39_v3, %v38_v2 }
   0xe   :  { %v41_v5 = vrot.slane %v40_v4, 1 }
  0x10   :  { %v42_v6 = vadd.f32 %v41_v5, %v40_v4 }
  0x12   :  { %v43_v7 = vmul.f32 0.125, %v42_v6 }
  0x14   :  { %44 = vst [vmem:[#allocation6] sm:$0x1] %v43_v7 }
  0x15   :  { %55 = dma.vmem_to_hbm [thread:$0]  %s51_s12, 16, %s53_s15, [#allocation5]  }
  0x16   :  { %114 = dma.done.wait [#allocation5], 16  }
  0x17   :  { %115 = vsyncadd [#allocation5], 4294967280 }
  0x18   :  { %60 = vsyncpa [#allocation4], 1 }
  0x19   :  { %61 = vsyncpa [#allocation5], 1 }

</bundles_post_ra>
